<compile_context>
chip_gen: v6e
topology: v6e:2x2x1
jax: 0.10.0
libtpu: 0.0.40
codegen_flags: <defaults>
</compile_context>

<pallas_src>
import numpy as np
import jax
import jax.numpy as jnp
from jax.experimental import pallas as pl
from jax.experimental.pallas import tpu as pltpu


# ---------------- deterministic parameter init (plain numpy glue) -------------
def get_beta2(D, Fc):
    # D: [ps/nm/km], Fc: [Hz] -> beta2 [s^2/km]
    c_kms = 299792458.0 / 1e3
    lamb = c_kms / Fc
    return -(D * lamb ** 2) / (2.0 * np.pi * c_kms)


def get_beta1(D, Fc, Fi):
    beta2 = get_beta2(D, Fc)
    return 2.0 * np.pi * (Fi - Fc) * beta2


def dispersion_kernel_time(dz, dtaps, Fs, beta2, beta1):
    # time-domain dispersion kernel -> [1, dtaps] complex64
    omega = 2.0 * np.pi * Fs * np.fft.fftfreq(dtaps)
    H = np.exp(-1j * beta1 * omega * dz - 1j * (beta2 / 2.0) * (omega ** 2) * dz)
    h = np.fft.fftshift(np.fft.ifft(H))
    return h[None, :].astype(np.complex64)


def _round_up(a, b):
    return ((a + b - 1) // b) * b


def _cdiv(a, b):
    return (a + b - 1) // b


def _split_bf16(a_f32):
    """Split f32 -> (hi, lo) bf16 planes for 3-pass bf16 matmul emulation."""
    hi = a_f32.astype(jnp.bfloat16)
    lo = (a_f32 - hi.astype(jnp.float32)).astype(jnp.bfloat16)
    return hi, lo


# ---------------------------- Pallas kernel -----------------------------------
def _dconv_mxu_kernel(h_ref, x_ref, o_ref):
    """One row-tile of the overlap-save complex correlation.

    h : [4, K_pad, SEG]     Toeplitz taps, planes (re_hi, re_lo, im_hi, im_lo), bf16
    x : [4, R_TILE, K_pad]  im2col windows, planes (re_hi, re_lo, im_hi, im_lo), bf16
    o : [2, R_TILE, SEG]    output tile, planes (re, im), f32
    """
    xr_hi, xr_lo, xi_hi, xi_lo = x_ref[0], x_ref[1], x_ref[2], x_ref[3]
    hr_hi, hr_lo, hi_hi, hi_lo = h_ref[0], h_ref[1], h_ref[2], h_ref[3]

    def mm(a, b):
        # native bf16 MXU matmul, f32 accumulation
        return jnp.dot(a, b, preferred_element_type=jnp.float32)

    def mm3(a_hi, a_lo, b_hi, b_lo):
        # bf16x3 emulation of an f32 matmul (drops the lo*lo term)
        return mm(a_hi, b_hi) + mm(a_hi, b_lo) + mm(a_lo, b_hi)

    o_ref[0] = mm3(xr_hi, xr_lo, hr_hi, hr_lo) - mm3(xi_hi, xi_lo, hi_hi, hi_lo)
    o_ref[1] = mm3(xr_hi, xr_lo, hi_hi, hi_lo) + mm3(xi_hi, xi_lo, hr_hi, hr_lo)


@jax.jit
def dconv_pallas(x, h):
    """x: [B, M, Nmodes] complex64, h: [dtaps] complex -> [B, M-dtaps+1, Nmodes] complex64."""
    B, M, Nmodes = x.shape
    dtaps = h.shape[0]
    if M < dtaps:
        raise ValueError(f"signal length M={M} must be >= dtaps={dtaps}")
    L = M - dtaps + 1
    R = B * Nmodes

    # ---- static tile geometry ----
    SEG = max(128, _round_up(2 * max(dtaps - 1, 1), 128))   # output samples per segment
    W = SEG + dtaps - 1                                     # input window per segment
    K_pad = _round_up(W, 8)                                 # contraction length (banded)
    n_seg = _cdiv(L, SEG)
    L_pad = n_seg * SEG

    ROWS = R * n_seg                                        # stacked (row, segment) pairs
    R_TILE = min(_round_up(ROWS, 16), 256)                  # feed 128/256-row MXU tiles
    ROWS_pad = _round_up(ROWS, R_TILE)
    n_r = ROWS_pad // R_TILE

    # ---- pack real/imag and build the overlap-save (im2col) LHS --------------
    # TODO(synk): in a full DBP loop this packed layout should be built once and
    # reused across all `step` filter applications instead of re-packed per call.
    xt = jnp.transpose(x, (0, 2, 1)).reshape(R, M)                        # [R, M]
    xri = jnp.stack([jnp.real(xt), jnp.imag(xt)]).astype(jnp.float32)     # [2, R, M]
    xri = jnp.pad(xri, ((0, 0), (0, 0), (0, L_pad + SEG - M)))            # zero tail

    mains = xri[:, :, :L_pad].reshape(2, R, n_seg, SEG)
    halos = xri[:, :, SEG:SEG + L_pad].reshape(2, R, n_seg, SEG)[:, :, :, :dtaps - 1]
    Xw = jnp.concatenate([mains, halos], axis=-1)                         # [2,R,n_seg,W]
    if K_pad > W:
        Xw = jnp.pad(Xw, ((0, 0), (0, 0), (0, 0), (0, K_pad - W)))
    Xw = Xw.reshape(2, ROWS, K_pad)
    if ROWS_pad > ROWS:
        Xw = jnp.pad(Xw, ((0, 0), (0, ROWS_pad - ROWS), (0, 0)))
    xw_hi, xw_lo = _split_bf16(Xw)                                        # [2,ROWS_pad,K_pad]
    Xp = jnp.stack([xw_hi[0], xw_lo[0], xw_hi[1], xw_lo[1]])              # [4,ROWS_pad,K_pad] bf16

    # ---- banded Toeplitz taps: H[k, l] = h[k - l] for 0 <= k - l < dtaps ------
    t = np.arange(K_pad)[:, None] - np.arange(SEG)[None, :]
    valid = jnp.asarray((t >= 0) & (t < dtaps))
    tclip = jnp.asarray(np.clip(t, 0, dtaps - 1))
    h_re = jnp.real(h).astype(jnp.float32)
    h_im = jnp.imag(h).astype(jnp.float32)
    Hr = jnp.where(valid, h_re[tclip], 0.0).astype(jnp.float32)
    Hi = jnp.where(valid, h_im[tclip], 0.0).astype(jnp.float32)
    hr_hi, hr_lo = _split_bf16(Hr)
    hi_hi, hi_lo = _split_bf16(Hi)
    Hp = jnp.stack([hr_hi, hr_lo, hi_hi, hi_lo])                          # [4,K_pad,SEG] bf16

    # ---- scheduler / VMEM hints ----
    flops = 24 * ROWS_pad * K_pad * SEG                                   # 12 bf16 matmuls
    bytes_accessed = (2 * (4 * ROWS_pad * K_pad + 4 * K_pad * SEG)        # bf16 inputs
                      + 4 * (2 * ROWS_pad * SEG))                         # f32 output
    per_step = (2 * 2 * 4 * K_pad * SEG                                   # taps (dbl-buffered)
                + 2 * 2 * 4 * R_TILE * K_pad                              # x tile
                + 2 * 4 * 2 * R_TILE * SEG)                               # output tile
    vmem_limit = int(min(max(4 * per_step, 32 * 2 ** 20), 48 * 2 ** 20))

    yri = pl.pallas_call(
        _dconv_mxu_kernel,
        out_shape=jax.ShapeDtypeStruct((2, ROWS_pad, SEG), jnp.float32),
        grid=(n_r,),
        in_specs=[
            pl.BlockSpec((4, K_pad, SEG), lambda r: (0, 0, 0)),       # taps (resident)
            pl.BlockSpec((4, R_TILE, K_pad), lambda r: (0, r, 0)),    # im2col row tile
        ],
        out_specs=pl.BlockSpec((2, R_TILE, SEG), lambda r: (0, r, 0)),
        compiler_params=pltpu.CompilerParams(
            dimension_semantics=("parallel",),
            vmem_limit_bytes=vmem_limit,
        ),
        cost_estimate=pl.CostEstimate(flops=int(flops), transcendentals=0,
                                      bytes_accessed=int(bytes_accessed)),
    )(Hp, Xp)

    # ---- unpack: [2, ROWS_pad, SEG] -> [B, L, Nmodes] complex64 ----
    y = yri[:, :ROWS, :].reshape(2, R, L_pad)[:, :, :L]
    yc = (y[0] + 1j * y[1]).astype(jnp.complex64)                         # [R, L]
    return yc.reshape(B, Nmodes, L).transpose(0, 2, 1)                    # [B, L, Nmodes]


# -------------------------- module-equivalent wrapper --------------------------
class DispersionFilterPallas:
    """JAX/Pallas port of pkufiber DispersionFilter (forward pass only)."""

    def __init__(self, step, dtaps, dz, Fs, d_train=True, d_share=False,
                 D=16.5, Fc=299792458 / 1.55e-06, Fi=299792458 / 1.55e-06):
        self.step = step
        self.dtaps = dtaps
        self.dz = dz
        self.Fs = Fs
        self.d_train = d_train
        self.d_share = d_share
        self.beta2 = get_beta2(D, Fc) / 1000.0
        self.beta1 = get_beta1(D, Fc, Fi) / 1000.0
        d_num = 1 if d_share else step
        dk = dispersion_kernel_time(-dz, dtaps, Fs, self.beta2, self.beta1)  # [1, dtaps]
        D_init = np.concatenate([dk] * d_num, axis=0)                        # [d_num, dtaps]
        self.Dkernel_real = jnp.asarray(D_init.real, dtype=jnp.float32)
        self.Dkernel_imag = jnp.asarray(D_init.imag, dtype=jnp.float32)
        # TODO(synk): dispersion_loss / train_filter (FFT-domain Adam training loop)
        # are host-side training utilities and are not implemented as Pallas kernels.

    def __call__(self, x, i):
        idx = min(int(i), self.Dkernel_real.shape[0] - 1)
        h = (self.Dkernel_real[idx] + 1j * self.Dkernel_imag[idx]).astype(jnp.complex64)
        return dconv_pallas(x, h)


# ----------------------------------- test --------------------------------------
if __name__ == "__main__":
    B, M, Nmodes = 2, 1000, 2
    step, dtaps = 3, 33
    dz, Fs = 1000.0, 80e9
    L = M - dtaps + 1

    filt = DispersionFilterPallas(step=step, dtaps=dtaps, dz=dz, Fs=Fs,
                                  d_train=True, d_share=False)

    key = jax.random.PRNGKey(0)
    kr, ki = jax.random.split(key)
    x = (jax.random.normal(kr, (B, M, Nmodes), dtype=jnp.float32)
         + 1j * jax.random.normal(ki, (B, M, Nmodes), dtype=jnp.float32)
         ).astype(jnp.complex64)

    i = 1
    y = jax.block_until_ready(filt(x, i))
    assert y.shape == (B, L, Nmodes)
    assert y.dtype == jnp.complex64

    # exact numpy complex128 reference (cross-correlation, F.conv1d semantics)
    sel = min(i, filt.Dkernel_real.shape[0] - 1)
    h_np = (np.asarray(filt.Dkernel_real[sel]).astype(np.float64)
            + 1j * np.asarray(filt.Dkernel_imag[sel]).astype(np.float64))
    x_np = np.asarray(x).astype(np.complex128)
    widx = np.arange(L)[:, None] + np.arange(dtaps)[None, :]   # [L, dtaps]
    win = x_np[:, widx, :]                                     # [B, L, dtaps, Nmodes]
    y_ref = np.einsum('bltn,t->bln', win, h_np)
    np.testing.assert_allclose(np.asarray(y), y_ref, atol=2e-4, rtol=2e-4)

    # exercise the i >= d_num clamp path as well (same compiled kernel)
    y2 = jax.block_until_ready(filt(x, 10))
    assert y2.shape == (B, L, Nmodes)

    print("KERNEL_OK")
</pallas_src>

<mosaic_0001>
module attributes {stable_mosaic.version = 11 : i64} {
  func.func @_dconv_mxu_kernel(%arg0: i32, %arg1: memref<4x160x128xbf16, #tpu.memory_space<vmem>>, %arg2: memref<4x32x160xbf16, #tpu.memory_space<vmem>>, %arg3: memref<2x32x128xf32, #tpu.memory_space<vmem>>) attributes {dimension_semantics = [#tpu.dimension_semantics<parallel>], iteration_bounds = array<i64: 1>, scalar_prefetch = 0 : i64, scratch_operands = 0 : i64, tpu.core_type = #tpu.core_type<tc>, window_params = [{pipeline_mode = #tpu.pipeline_mode<synchronous>, transform_indices = @transform_0, window_bounds = array<i64: 4, 160, 128>}, {transform_indices = @transform_1, window_bounds = array<i64: 4, 32, 160>}, {transform_indices = @transform_2, window_bounds = array<i64: 2, 32, 128>}]} {
    %c0 = arith.constant 0 : index
    %c0_0 = arith.constant 0 : index
    %c0_1 = arith.constant 0 : index
    %0 = vector.load %arg2[%c0, %c0_0, %c0_1] : memref<4x32x160xbf16, #tpu.memory_space<vmem>>, vector<1x32x160xbf16>
    %1 = vector.shape_cast %0 : vector<1x32x160xbf16> to vector<32x160xbf16>
    %c1 = arith.constant 1 : index
    %c0_2 = arith.constant 0 : index
    %c0_3 = arith.constant 0 : index
    %2 = vector.load %arg2[%c1, %c0_2, %c0_3] : memref<4x32x160xbf16, #tpu.memory_space<vmem>>, vector<1x32x160xbf16>
    %3 = vector.shape_cast %2 : vector<1x32x160xbf16> to vector<32x160xbf16>
    %c2 = arith.constant 2 : index
    %c0_4 = arith.constant 0 : index
    %c0_5 = arith.constant 0 : index
    %4 = vector.load %arg2[%c2, %c0_4, %c0_5] : memref<4x32x160xbf16, #tpu.memory_space<vmem>>, vector<1x32x160xbf16>
    %5 = vector.shape_cast %4 : vector<1x32x160xbf16> to vector<32x160xbf16>
    %c3 = arith.constant 3 : index
    %c0_6 = arith.constant 0 : index
    %c0_7 = arith.constant 0 : index
    %6 = vector.load %arg2[%c3, %c0_6, %c0_7] : memref<4x32x160xbf16, #tpu.memory_space<vmem>>, vector<1x32x160xbf16>
    %7 = vector.shape_cast %6 : vector<1x32x160xbf16> to vector<32x160xbf16>
    %c0_8 = arith.constant 0 : index
    %c0_9 = arith.constant 0 : index
    %c0_10 = arith.constant 0 : index
    %8 = vector.load %arg1[%c0_8, %c0_9, %c0_10] : memref<4x160x128xbf16, #tpu.memory_space<vmem>>, vector<1x160x128xbf16>
    %9 = vector.shape_cast %8 : vector<1x160x128xbf16> to vector<160x128xbf16>
    %c1_11 = arith.constant 1 : index
    %c0_12 = arith.constant 0 : index
    %c0_13 = arith.constant 0 : index
    %10 = vector.load %arg1[%c1_11, %c0_12, %c0_13] : memref<4x160x128xbf16, #tpu.memory_space<vmem>>, vector<1x160x128xbf16>
    %11 = vector.shape_cast %10 : vector<1x160x128xbf16> to vector<160x128xbf16>
    %c2_14 = arith.constant 2 : index
    %c0_15 = arith.constant 0 : index
    %c0_16 = arith.constant 0 : index
    %12 = vector.load %arg1[%c2_14, %c0_15, %c0_16] : memref<4x160x128xbf16, #tpu.memory_space<vmem>>, vector<1x160x128xbf16>
    %13 = vector.shape_cast %12 : vector<1x160x128xbf16> to vector<160x128xbf16>
    %c3_17 = arith.constant 3 : index
    %c0_18 = arith.constant 0 : index
    %c0_19 = arith.constant 0 : index
    %14 = vector.load %arg1[%c3_17, %c0_18, %c0_19] : memref<4x160x128xbf16, #tpu.memory_space<vmem>>, vector<1x160x128xbf16>
    %15 = vector.shape_cast %14 : vector<1x160x128xbf16> to vector<160x128xbf16>
    %cst = arith.constant dense<0.000000e+00> : vector<32x128xf32>
    %16 = tpu.matmul %1, %9, %cst {dimension_numbers = #tpu.dot_dimension_numbers<[1], [0], [0], [1], [0, 0, 1, 1], [], []>} : vector<32x160xbf16>, vector<160x128xbf16>, vector<32x128xf32> -> vector<32x128xf32>
    %cst_20 = arith.constant dense<0.000000e+00> : vector<32x128xf32>
    %17 = tpu.matmul %1, %11, %cst_20 {dimension_numbers = #tpu.dot_dimension_numbers<[1], [0], [0], [1], [0, 0, 1, 1], [], []>} : vector<32x160xbf16>, vector<160x128xbf16>, vector<32x128xf32> -> vector<32x128xf32>
    %18 = arith.addf %16, %17 : vector<32x128xf32>
    %cst_21 = arith.constant dense<0.000000e+00> : vector<32x128xf32>
    %19 = tpu.matmul %3, %9, %cst_21 {dimension_numbers = #tpu.dot_dimension_numbers<[1], [0], [0], [1], [0, 0, 1, 1], [], []>} : vector<32x160xbf16>, vector<160x128xbf16>, vector<32x128xf32> -> vector<32x128xf32>
    %20 = arith.addf %18, %19 : vector<32x128xf32>
    %cst_22 = arith.constant dense<0.000000e+00> : vector<32x128xf32>
    %21 = tpu.matmul %5, %13, %cst_22 {dimension_numbers = #tpu.dot_dimension_numbers<[1], [0], [0], [1], [0, 0, 1, 1], [], []>} : vector<32x160xbf16>, vector<160x128xbf16>, vector<32x128xf32> -> vector<32x128xf32>
    %cst_23 = arith.constant dense<0.000000e+00> : vector<32x128xf32>
    %22 = tpu.matmul %5, %15, %cst_23 {dimension_numbers = #tpu.dot_dimension_numbers<[1], [0], [0], [1], [0, 0, 1, 1], [], []>} : vector<32x160xbf16>, vector<160x128xbf16>, vector<32x128xf32> -> vector<32x128xf32>
    %23 = arith.addf %21, %22 : vector<32x128xf32>
    %cst_24 = arith.constant dense<0.000000e+00> : vector<32x128xf32>
    %24 = tpu.matmul %7, %13, %cst_24 {dimension_numbers = #tpu.dot_dimension_numbers<[1], [0], [0], [1], [0, 0, 1, 1], [], []>} : vector<32x160xbf16>, vector<160x128xbf16>, vector<32x128xf32> -> vector<32x128xf32>
    %25 = arith.addf %23, %24 : vector<32x128xf32>
    %26 = arith.subf %20, %25 : vector<32x128xf32>
    %c0_25 = arith.constant 0 : index
    %c0_26 = arith.constant 0 : index
    %c0_27 = arith.constant 0 : index
    %27 = vector.load %arg3[%c0_25, %c0_26, %c0_27] : memref<2x32x128xf32, #tpu.memory_space<vmem>>, vector<1x32x128xf32>
    %28 = vector.shape_cast %27 : vector<1x32x128xf32> to vector<32x128xf32>
    %29 = vector.shape_cast %26 : vector<32x128xf32> to vector<1x32x128xf32>
    tpu.vector_store %arg3[%c0_25, %c0_26, %c0_27], %29 {strides = array<i32>} : memref<2x32x128xf32, #tpu.memory_space<vmem>>, vector<1x32x128xf32>,
    %cst_28 = arith.constant dense<0.000000e+00> : vector<32x128xf32>
    %30 = tpu.matmul %1, %13, %cst_28 {dimension_numbers = #tpu.dot_dimension_numbers<[1], [0], [0], [1], [0, 0, 1, 1], [], []>} : vector<32x160xbf16>, vector<160x128xbf16>, vector<32x128xf32> -> vector<32x128xf32>
    %cst_29 = arith.constant dense<0.000000e+00> : vector<32x128xf32>
    %31 = tpu.matmul %1, %15, %cst_29 {dimension_numbers = #tpu.dot_dimension_numbers<[1], [0], [0], [1], [0, 0, 1, 1], [], []>} : vector<32x160xbf16>, vector<160x128xbf16>, vector<32x128xf32> -> vector<32x128xf32>
    %32 = arith.addf %30, %31 : vector<32x128xf32>
    %cst_30 = arith.constant dense<0.000000e+00> : vector<32x128xf32>
    %33 = tpu.matmul %3, %13, %cst_30 {dimension_numbers = #tpu.dot_dimension_numbers<[1], [0], [0], [1], [0, 0, 1, 1], [], []>} : vector<32x160xbf16>, vector<160x128xbf16>, vector<32x128xf32> -> vector<32x128xf32>
    %34 = arith.addf %32, %33 : vector<32x128xf32>
    %cst_31 = arith.constant dense<0.000000e+00> : vector<32x128xf32>
    %35 = tpu.matmul %5, %9, %cst_31 {dimension_numbers = #tpu.dot_dimension_numbers<[1], [0], [0], [1], [0, 0, 1, 1], [], []>} : vector<32x160xbf16>, vector<160x128xbf16>, vector<32x128xf32> -> vector<32x128xf32>
    %cst_32 = arith.constant dense<0.000000e+00> : vector<32x128xf32>
    %36 = tpu.matmul %5, %11, %cst_32 {dimension_numbers = #tpu.dot_dimension_numbers<[1], [0], [0], [1], [0, 0, 1, 1], [], []>} : vector<32x160xbf16>, vector<160x128xbf16>, vector<32x128xf32> -> vector<32x128xf32>
    %37 = arith.addf %35, %36 : vector<32x128xf32>
    %cst_33 = arith.constant dense<0.000000e+00> : vector<32x128xf32>
    %38 = tpu.matmul %7, %9, %cst_33 {dimension_numbers = #tpu.dot_dimension_numbers<[1], [0], [0], [1], [0, 0, 1, 1], [], []>} : vector<32x160xbf16>, vector<160x128xbf16>, vector<32x128xf32> -> vector<32x128xf32>
    %39 = arith.addf %37, %38 : vector<32x128xf32>
    %40 = arith.addf %34, %39 : vector<32x128xf32>
    %c1_34 = arith.constant 1 : index
    %c0_35 = arith.constant 0 : index
    %c0_36 = arith.constant 0 : index
    %41 = vector.load %arg3[%c1_34, %c0_35, %c0_36] : memref<2x32x128xf32, #tpu.memory_space<vmem>>, vector<1x32x128xf32>
    %42 = vector.shape_cast %41 : vector<1x32x128xf32> to vector<32x128xf32>
    %43 = vector.shape_cast %40 : vector<32x128xf32> to vector<1x32x128xf32>
    tpu.vector_store %arg3[%c1_34, %c0_35, %c0_36], %43 {strides = array<i32>} : memref<2x32x128xf32, #tpu.memory_space<vmem>>, vector<1x32x128xf32>,
    return
  }
  func.func @transform_0(%arg0: i32) -> (i32, i32, i32) {
    %c0_i32 = arith.constant 0 : i32
    %c0_i32_0 = arith.constant 0 : i32
    %c0_i32_1 = arith.constant 0 : i32
    %c0_i32_2 = arith.constant 0 : i32
    return %c0_i32, %c0_i32_0, %c0_i32_1 : i32, i32, i32
  }
  func.func @transform_1(%arg0: i32) -> (i32, i32, i32) {
    %c0_i32 = arith.constant 0 : i32
    %c0_i32_0 = arith.constant 0 : i32
    %c0_i32_1 = arith.constant 0 : i32
    return %c0_i32, %arg0, %c0_i32_0 : i32, i32, i32
  }
  func.func @transform_2(%arg0: i32) -> (i32, i32, i32) {
    %c0_i32 = arith.constant 0 : i32
    %c0_i32_0 = arith.constant 0 : i32
    %c0_i32_1 = arith.constant 0 : i32
    return %c0_i32, %arg0, %c0_i32_0 : i32, i32, i32
  }
}

</mosaic_0001>

<bundles_post_ra>
// kernel: custom-call
= control target key start
LH: loop header
LB: loop body
LE: loop exit
PB: predicated region body
PF: predicated region fallthrough
CT: control target
= control target key end

     0   :  { %2 = vsyncpa [#allocation0], 0  ;;  %s47_s0 = inlined_call_operand.hbm [shape: c64[33], index: 0, kind: input, shape index: {}]   ;;  %s48_s1 = inlined_call_operand.vmem [shape: f32[33], index: 1, kind: output, shape index: {}]  }
   0x1   :  { %s3_s8 = sshll.u32 %s48_s1, 4  ;;  %s4_s8 = int_to_ptr.vmem [resolvable:$true] %s3_s8 }
   0x2   :  { %s17_s9 = scalar_lea.vmem %s4_s8, 16  ;;  %p22_p1 = scmp.lt.s32.totalorder %s4_s8, %s4_s8 }
   0x3   :  { %p18_p0 = scmp.ne.s32.totalorder %s4_s8, %s17_s9  ;;  %p23_p2 = scmp.lt.s32.totalorder %s17_s9, %s17_s9 }
   0x5   :  { %p24_p3 = por %p23_p2, %p22_p1 }
   0x7   :  { %p25_p4 = pnand %p24_p3, %p18_p0 }
   0x9   :  { %28 = shalt.err (!%p25_p4)  }
   0xa   :  { %6 = dma.hbm_to_vmem [thread:$0]  %s47_s0, 16, %s4_s8, [#allocation0] }
   0xb   :  { %29 = dma.done.wait [#allocation0], 16  }
   0xc   :  { %30 = vsyncadd [#allocation0], 4294967280 }
   0xd   :  { %8 = vsyncpa [#allocation0], 1 }

// kernel: custom-call.1
= control target key start
LH: loop header
LB: loop body
LE: loop exit
PB: predicated region body
PF: predicated region fallthrough
CT: control target
= control target key end

     0   :  { %s51_s0 = inlined_call_operand.hbm [shape: c64[33], index: 0, kind: input, shape index: {}]   ;;  %s52_s1 = inlined_call_operand.vmem [shape: f32[33], index: 1, kind: output, shape index: {}]  }
   0x1   :  { %s2_s8 = scalar_lea.hbm %s51_s0, 16 }
   0x2   :  { %3 = vsyncpa [#allocation0], 0  ;;  %s4_s11 = sshll.u32 %s52_s1, 4  ;;  %s5_s11 = int_to_ptr.vmem [resolvable:$true] %s4_s11 }
   0x3   :  { %s20_s12 = scalar_lea.vmem %s5_s11, 16  ;;  %p25_p1 = scmp.lt.s32.totalorder %s5_s11, %s5_s11 }
   0x4   :  { %p21_p0 = scmp.ne.s32.totalorder %s5_s11, %s20_s12  ;;  %p26_p2 = scmp.lt.s32.totalorder %s20_s12, %s20_s12 }
   0x6   :  { %p27_p3 = por %p26_p2, %p25_p1 }
   0x8   :  { %p28_p4 = pnand %p27_p3, %p21_p0 }
   0xa   :  { %31 = shalt.err (!%p28_p4)  }
   0xb   :  { %7 = dma.hbm_to_vmem [thread:$0]  %s2_s8, 16, %s5_s11, [#allocation0] }
   0xc   :  { %33 = dma.done.wait [#allocation0], 16  }
   0xd   :  { %34 = vsyncadd [#allocation0], 4294967280 }
   0xe   :  { %9 = vsyncpa [#allocation0], 1 }

// kernel: custom-call.3
= control target key start
LH: loop header
LB: loop body
LE: loop exit
PB: predicated region body
PF: predicated region fallthrough
CT: control target
= control target key end

     0   :  { %s51_s0 = inlined_call_operand.hbm [shape: c64[2,1000,2], index: 0, kind: input, shape index: {}]   ;;  %s52_s1 = inlined_call_operand.vmem [shape: f32[2,1000,2], index: 1, kind: output, shape index: {}]  }
   0x1   :  { %s2_s8 = scalar_lea.hbm %s51_s0, 512 }
   0x2   :  { %3 = vsyncpa [#allocation0], 0  ;;  %s4_s11 = sshll.u32 %s52_s1, 4  ;;  %s5_s11 = int_to_ptr.vmem [resolvable:$true] %s4_s11 }
   0x3   :  { %s20_s12 = scalar_lea.vmem %s5_s11, 512  ;;  %p25_p1 = scmp.lt.s32.totalorder %s5_s11, %s5_s11 }
   0x4   :  { %p21_p0 = scmp.ne.s32.totalorder %s5_s11, %s20_s12  ;;  %p26_p2 = scmp.lt.s32.totalorder %s20_s12, %s20_s12 }
   0x6   :  { %p27_p3 = por %p26_p2, %p25_p1 }
   0x8   :  { %p28_p4 = pnand %p27_p3, %p21_p0 }
   0xa   :  { %31 = shalt.err (!%p28_p4)  }
   0xb   :  { %7 = dma.hbm_to_vmem [thread:$0]  %s2_s8, 512, %s5_s11, [#allocation0] }
   0xc   :  { %33 = dma.done.wait [#allocation0], 512  }
   0xd   :  { %34 = vsyncadd [#allocation0], 4294966784 }
   0xe   :  { %9 = vsyncpa [#allocation0], 1 }

// kernel: custom-call.2
= control target key start
LH: loop header
LB: loop body
LE: loop exit
PB: predicated region body
PF: predicated region fallthrough
CT: control target
= control target key end

     0   :  { %2 = vsyncpa [#allocation0], 0  ;;  %s47_s0 = inlined_call_operand.hbm [shape: c64[2,1000,2], index: 0, kind: input, shape index: {}]   ;;  %s48_s1 = inlined_call_operand.vmem [shape: f32[2,1000,2], index: 1, kind: output, shape index: {}]  }
   0x1   :  { %s3_s8 = sshll.u32 %s48_s1, 4  ;;  %s4_s8 = int_to_ptr.vmem [resolvable:$true] %s3_s8 }
   0x2   :  { %s17_s9 = scalar_lea.vmem %s4_s8, 512  ;;  %p22_p1 = scmp.lt.s32.totalorder %s4_s8, %s4_s8 }
   0x3   :  { %p18_p0 = scmp.ne.s32.totalorder %s4_s8, %s17_s9  ;;  %p23_p2 = scmp.lt.s32.totalorder %s17_s9, %s17_s9 }
   0x5   :  { %p24_p3 = por %p23_p2, %p22_p1 }
   0x7   :  { %p25_p4 = pnand %p24_p3, %p18_p0 }
   0x9   :  { %28 = shalt.err (!%p25_p4)  }
   0xa   :  { %6 = dma.hbm_to_vmem [thread:$0]  %s47_s0, 512, %s4_s8, [#allocation0] }
   0xb   :  { %29 = dma.done.wait [#allocation0], 512  }
   0xc   :  { %30 = vsyncadd [#allocation0], 4294966784 }
   0xd   :  { %8 = vsyncpa [#allocation0], 1 }

// kernel: custom-call.4
= control target key start
LH: loop header
LB: loop body
LE: loop exit
PB: predicated region body
PF: predicated region fallthrough
CT: control target
= control target key end

     0   :  { %s92_s0 = inlined_call_operand.vmem [shape: f32[2,968,2], index: 0, kind: input, shape index: {}]   ;;  %s93_s1 = inlined_call_operand.vmem [shape: f32[2,968,2], index: 1, kind: input, shape index: {}]   ;;  %s94_s2 = inlined_call_operand.hbm [shape: c64[2,968,2], index: 2, kind: output, shape index: {}]  }
   0x1   :  { %s3_s11 = scalar_lea.hbm %s94_s2, 512 }
   0x2   :  { %4 = vsyncpa [#allocation0], 0  ;;  %s5_s14 = sshll.u32 %s92_s0, 4  ;;  %s6_s14 = int_to_ptr.vmem [resolvable:$true] %s5_s14 }
   0x3   :  { %s18_s15 = scalar_lea.vmem %s6_s14, 512  ;;  %p23_p1 = scmp.lt.s32.totalorder %s6_s14, %s6_s14 }
   0x4   :  { %p19_p0 = scmp.ne.s32.totalorder %s6_s14, %s18_s15  ;;  %p24_p2 = scmp.lt.s32.totalorder %s18_s15, %s18_s15 }
   0x6   :  { %p25_p3 = por %p24_p2, %p23_p1 }
   0x8   :  { %p26_p4 = pnand %p25_p3, %p19_p0 }
   0xa   :  { %29 = shalt.err (!%p26_p4)  }
   0xb   :  { %8 = dma.vmem_to_hbm [thread:$0]  %s6_s14, 512, %s94_s2, [#allocation0] }
   0xc   :  { %61 = dma.done.wait [#allocation0], 512  }
   0xd   :  { %62 = vsyncadd [#allocation0], 4294966784 }
   0xe   :  { %10 = vsyncpa [#allocation0], 1 }
   0xf   :  { %11 = vsyncpa [#allocation1], 0  ;;  %s12_s0 = sshll.u32 %s93_s1, 4  ;;  %s13_s0 = int_to_ptr.vmem [resolvable:$true] %s12_s0 }
  0x10   :  { %s38_s20 = scalar_lea.vmem %s13_s0, 512  ;;  %p43_p6 = scmp.lt.s32.totalorder %s13_s0, %s13_s0 }
  0x11   :  { %p39_p5 = scmp.ne.s32.totalorder %s13_s0, %s38_s20  ;;  %p44_p7 = scmp.lt.s32.totalorder %s38_s20, %s38_s20 }
  0x13   :  { %p45_p8 = por %p44_p7, %p43_p6 }
  0x15   :  { %p46_p9 = pnand %p45_p8, %p39_p5 }
  0x17   :  { %49 = shalt.err (!%p46_p9)  }
  0x18   :  { %15 = dma.vmem_to_hbm [thread:$0]  %s13_s0, 512, %s3_s11, [#allocation1] }
  0x19   :  { %63 = dma.done.wait [#allocation1], 512  }
  0x1a   :  { %64 = vsyncadd [#allocation1], 4294966784 }
  0x1b   :  { %17 = vsyncpa [#allocation1], 1 }

// kernel: dconv_pallas.1
= control target key start
LH: loop header
LB: loop body
LE: loop exit
PB: predicated region body
PF: predicated region fallthrough
CT: control target
= control target key end

     0   :  { %v1297_v0 = vmov 0   ;;  %vm192_vm0 = vcmask 261120   ;;  %s1929_s0 = inlined_call_operand.vmem [shape: bf16[4,160,128], index: 0, kind: input, shape index: {}]   ;;  %s1930_s1 = inlined_call_operand.vmem [shape: bf16[4,32,160], index: 1, kind: input, shape index: {}]   ;;  %s1931_s2 = inlined_call_operand.vmem [shape: f32[2,32,128], index: 2, kind: output, shape index: {}]  }
   0x1   :  { %199 = vmatprep.subr.bf16.mxu0 %v1297_v0  ;;  %308 = vmatprep.subr.bf16.mxu1 %v1297_v0  ;;  %v1318_v1 = vld [vmem:[%s1929_s0 + $0x88] sm:$0xff]   ;;  %v1323_v2 = vld [vmem:[%s1929_s0 + $0x38] sm:$0xff]   ;;  %v1329_v3 = vld [vmem:[%s1929_s0 + $0x80] sm:$0xff]  }
   0x2   :  { %200 = vmatpush1.bf16.msra.mxu0 %v1318_v1  ;;  %309 = vmatpush1.bf16.msra.mxu1 %v1323_v2  ;;  %v1336_v4 = vld [vmem:[%s1929_s0 + $0x30] sm:$0xff]   ;;  %v1343_v5 = vld [vmem:[%s1929_s0 + $0x78] sm:$0xff]   ;;  %v1350_v6 = vld [vmem:[%s1929_s0 + $0x28] sm:$0xff]  }
   0x3   :  { %201 = vmatprep.subr.bf16.mxu0 %v1297_v0  ;;  %310 = vmatprep.subr.bf16.mxu1 %v1297_v0  ;;  %v1357_v7 = vld [vmem:[%s1929_s0 + $0x70] sm:$0xff]   ;;  %v1364_v8 = vld [vmem:[%s1929_s0 + $0x20] sm:$0xff]   ;;  %v1371_v9 = vld [vmem:[%s1929_s0 + $0x68] sm:$0xff]  }
   0x4   :  { %v1378_v10 = vld [vmem:[%s1929_s0 + $0x18] sm:$0xff]   ;;  %v1385_v11 = vld [vmem:[%s1929_s0 + $0x60] sm:$0xff]   ;;  %v1392_v12 = vld [vmem:[%s1929_s0 + $0x10] sm:$0xff]  }
   0x5   :  { %v1398_v13 = vld [vmem:[%s1930_s1 + $0x4] ss:$8 sps:$4 sm:$0xff]   ;;  %v1404_v14 = vld [vmem:[%s1929_s0 + $0x58] sm:$0xff]   ;;  %v1422_v16 = vld [vmem:[%s1929_s0 + $0x50] sm:$0xff]  }
   0x6   :  { %202 = vmatpush1.bf16.msra.mxu0 %v1329_v3  ;;  %311 = vmatpush1.bf16.msra.mxu1 %v1336_v4  ;;  %v1413_v15 = vld [vmem:[%s1929_s0 + $0x8] sm:$0xff]   ;;  %v1429_v17 = vld [vmem:[%s1929_s0] sm:$0xff]   ;;  %v1436_v18 = vld [vmem:[%s1929_s0 + $0x98] sm:$0xff]  }
   0x7   :  { %203 = vmatprep.subr.bf16.mxu0 %v1297_v0  ;;  %312 = vmatprep.subr.bf16.mxu1 %v1297_v0  ;;  %v1443_v19 = vld [vmem:[%s1929_s0 + $0x48] sm:$0xff]   ;;  %v1450_v20 = vld [vmem:[%s1929_s0 + $0x90] sm:$0xff]   ;;  %v1457_v21 = vld [vmem:[%s1929_s0 + $0x40] sm:$0xff]  }
   0x8   :  { %1162 = vmatprep.mubr.msk.bf16.mxu0 %vm192_vm0, %v1398_v13  ;;  %1174 = vmatprep.mubr.msk.bf16.mxu1 %vm192_vm0, %v1398_v13  ;;  %v1463_v22 = vld [vmem:[%s1930_s1] ss:$8 sps:$4 sm:$0xff]   ;;  %v1477_v24 = vld [vmem:[%s1930_s1 + $0x14] ss:$8 sps:$4 sm:$0xff]   ;;  %v1495_v26 = vld [vmem:[%s1930_s1 + $0x10] ss:$8 sps:$4 sm:$0xff]  }
   0x9   :  { %v1471_v23 = vld [vmem:[%s1929_s0 + $0x128] sm:$0xff]   ;;  %v1487_v25 = vld [vmem:[%s1929_s0 + $0x120] sm:$0xff]   ;;  %v1505_v27 = vld [vmem:[%s1929_s0 + $0x118] sm:$0xff]  }
   0xa   :  { %204 = vmatpush1.bf16.msra.mxu0 %v1343_v5  ;;  %313 = vmatpush1.bf16.msra.mxu1 %v1350_v6  ;;  %v1511_v28 = vld [vmem:[%s1930_s1 + $0x24] ss:$8 sps:$4 sm:$0xff]   ;;  %v1526_v30 = vld [vmem:[%s1929_s0 + $0x110] sm:$0xff]   ;;  %v1557_v33 = vld [vmem:[%s1929_s0 + $0xf8] sm:$0xff]  }
   0xb   :  { %205 = vmatprep.subr.bf16.mxu0 %v1297_v0  ;;  %314 = vmatprep.subr.bf16.mxu1 %v1297_v0  ;;  %v1517_v29 = vld [vmem:[%s1930_s1 + $0x44] ss:$8 sps:$4 sm:$0xff]   ;;  %v1566_v34 = vld [vmem:[%s1929_s0 + $0xf0] sm:$0xff]   ;;  %v1575_v35 = vld [vmem:[%s1929_s0 + $0x138] sm:$0xff]  }
   0xc   :  { %v1539_v31 = vld [vmem:[%s1929_s0 + $0x108] sm:$0xff]   ;;  %v1548_v32 = vld [vmem:[%s1929_s0 + $0x100] sm:$0xff]   ;;  %v1584_v36 = vld [vmem:[%s1929_s0 + $0x130] sm:$0xff]  }
   0xd   :  { %v1590_v37 = vld [vmem:[%s1930_s1 + $0x20] ss:$8 sps:$4 sm:$0xff]   ;;  %v1601_v39 = vld [vmem:[%s1929_s0 + $0xd8] sm:$0xff]   ;;  %v1622_v42 = vld [vmem:[%s1929_s0 + $0xd0] sm:$0xff]  }
   0xe   :  { %206 = vmatpush1.bf16.msra.mxu0 %v1357_v7  ;;  %315 = vmatpush1.bf16.msra.mxu1 %v1364_v8  ;;  %v1596_v38 = vld [vmem:[%s1930_s1 + $0x40] ss:$8 sps:$4 sm:$0xff]   ;;  %v1609_v40 = vld [vmem:[%s1930_s1 + $0x34] ss:$8 sps:$4 sm:$0xff]   ;;  %v1632_v43 = vld [vmem:[%s1930_s1 + $0x30] ss:$8 sps:$4 sm:$0xff]  }
   0xf   :  { %207 = vmatprep.subr.bf16.mxu0 %v1297_v0  ;;  %316 = vmatprep.subr.bf16.mxu1 %v1297_v0  ;;  %v1615_v41 = vld [vmem:[%s1930_s1 + $0x54] ss:$8 sps:$4 sm:$0xff]   ;;  %v1640_v44 = vld [vmem:[%s1929_s0 + $0xc8] sm:$0xff]   ;;  %v1645_v45 = vld [vmem:[%s1930_s1 + $0x50] ss:$8 sps:$4 sm:$0xff]  }
  0x10   :  { %v1654_v46 = vld [vmem:[%s1930_s1 + $0x64] ss:$8 sps:$4 sm:$0xff]   ;;  %v1674_v48 = vld [vmem:[%s1929_s0 + $0xb8] sm:$0xff]   ;;  %v1683_v49 = vld [vmem:[%s1929_s0 + $0xb0] sm:$0xff]  }
  0x11   :  { %v1660_v47 = vld [vmem:[%s1929_s0 + $0xc0] sm:$0xff]   ;;  %v1692_v50 = vld [vmem:[%s1929_s0 + $0xa8] sm:$0xff]   ;;  %v1737_v55 = vld [vmem:[%s1930_s1 + $0x74] ss:$8 sps:$4 sm:$0xff]  }
  0x12   :  { %208 = vmatpush1.bf16.msra.mxu0 %v1371_v9  ;;  %317 = vmatpush1.bf16.msra.mxu1 %v1378_v10  ;;  %v1701_v51 = vld [vmem:[%s1929_s0 + $0xa0] sm:$0xff]   ;;  %v1710_v52 = vld [vmem:[%s1929_s0 + $0xe8] sm:$0xff]   ;;  %v1752_v56 = vld [vmem:[%s1930_s1 + $0x70] ss:$8 sps:$4 sm:$0xff]  }
  0x13   :  { %209 = vmatprep.subr.bf16.mxu0 %v1297_v0  ;;  %318 = vmatprep.subr.bf16.mxu1 %v1297_v0  ;;  %v1719_v53 = vld [vmem:[%s1929_s0 + $0xe0] sm:$0xff]  }
  0x14   :  { %v1728_v54 = vld [vmem:[%s1930_s1 + $0x60] ss:$8 sps:$4 sm:$0xff]  }
  0x16   :  { %210 = vmatpush1.bf16.msra.mxu0 %v1385_v11  ;;  %319 = vmatpush1.bf16.msra.mxu1 %v1392_v12 }
  0x17   :  { %211 = vmatprep.subr.bf16.mxu0 %v1297_v0  ;;  %320 = vmatprep.subr.bf16.mxu1 %v1297_v0 }
  0x1a   :  { %212 = vmatpush1.bf16.msra.mxu0 %v1404_v14  ;;  %321 = vmatpush1.bf16.msra.mxu1 %v1413_v15 }
  0x1b   :  { %213 = vmatprep.subr.bf16.mxu0 %v1297_v0  ;;  %322 = vmatprep.subr.bf16.mxu1 %v1297_v0 }
  0x1e   :  { %214 = vmatpush1.bf16.msra.mxu0 %v1422_v16  ;;  %323 = vmatpush1.bf16.msra.mxu1 %v1429_v17 }
  0x1f   :  { %227 = vmatprep.subr.bf16.mxu0 %v1297_v0  ;;  %336 = vmatprep.subr.bf16.mxu1 %v1297_v0 }
  0x22   :  { %228 = vmatpush2.bf16.msra.mxu0 %v1436_v18  ;;  %337 = vmatpush2.bf16.msra.mxu1 %v1443_v19 }
  0x23   :  { %229 = vmatprep.subr.bf16.mxu0 %v1297_v0  ;;  %338 = vmatprep.subr.bf16.mxu1 %v1297_v0 }
  0x26   :  { %230 = vmatpush2.bf16.msra.mxu0 %v1450_v20  ;;  %339 = vmatpush2.bf16.msra.mxu1 %v1457_v21 }
  0x27   :  { %381 = vmatprep.subr.bf16.mxu0 %v1297_v0  ;;  %518 = vmatprep.subr.bf16.mxu1 %v1297_v0 }
  0x29   :  { %232 = vmatmul.mubr.bf16.vlgmr.msra.gmra.mxu0 %v1463_v22  ;;  %341 = vmatmul.mubr.bf16.vlgmr.msra.gmra.mxu1 %v1463_v22 }
  0x2a   :  { %382 = vmatpush1.bf16.msra.mxu0 %v1323_v2  ;;  %519 = vmatpush1.bf16.msra.mxu1 %v1471_v23 }
  0x2b   :  { %383 = vmatprep.subr.bf16.mxu0 %v1297_v0  ;;  %520 = vmatprep.subr.bf16.mxu1 %v1297_v0 }
  0x2c   :  { %1163 = vmatprep.mubr.msk.bf16.mxu0 %vm192_vm0, %v1477_v24  ;;  %1175 = vmatprep.mubr.msk.bf16.mxu1 %vm192_vm0, %v1477_v24 }
  0x2e   :  { %384 = vmatpush1.bf16.msra.mxu0 %v1336_v4  ;;  %521 = vmatpush1.bf16.msra.mxu1 %v1487_v25 }
  0x2f   :  { %385 = vmatprep.subr.bf16.mxu0 %v1297_v0  ;;  %522 = vmatprep.subr.bf16.mxu1 %v1297_v0 }
  0x31   :  { %240 = vmatmul.mubr.bf16.gmra.mxu0 %v1495_v26  ;;  %349 = vmatmul.mubr.bf16.gmra.mxu1 %v1495_v26 }
  0x32   :  { %386 = vmatpush1.bf16.msra.mxu0 %v1350_v6  ;;  %523 = vmatpush1.bf16.msra.mxu1 %v1505_v27 }
  0x33   :  { %387 = vmatprep.subr.bf16.mxu0 %v1297_v0  ;;  %524 = vmatprep.subr.bf16.mxu1 %v1297_v0 }
  0x34   :  { %1180 = vmatprep.mubr.msk.bf16.mxu0 %vm192_vm0, %v1511_v28  ;;  %1196 = vmatprep.mubr.msk.bf16.mxu1 %vm192_vm0, %v1517_v29 }
  0x36   :  { %388 = vmatpush1.bf16.msra.mxu0 %v1364_v8  ;;  %525 = vmatpush1.bf16.msra.mxu1 %v1526_v30 }
  0x37   :  { %389 = vmatprep.subr.bf16.mxu0 %v1297_v0  ;;  %526 = vmatprep.subr.bf16.mxu1 %v1297_v0 }
  0x3a   :  { %390 = vmatpush1.bf16.msra.mxu0 %v1378_v10  ;;  %527 = vmatpush1.bf16.msra.mxu1 %v1539_v31 }
  0x3b   :  { %391 = vmatprep.subr.bf16.mxu0 %v1297_v0  ;;  %528 = vmatprep.subr.bf16.mxu1 %v1297_v0 }
  0x3e   :  { %392 = vmatpush1.bf16.msra.mxu0 %v1392_v12  ;;  %529 = vmatpush1.bf16.msra.mxu1 %v1548_v32 }
  0x3f   :  { %393 = vmatprep.subr.bf16.mxu0 %v1297_v0  ;;  %530 = vmatprep.subr.bf16.mxu1 %v1297_v0 }
  0x42   :  { %394 = vmatpush1.bf16.msra.mxu0 %v1413_v15  ;;  %531 = vmatpush1.bf16.msra.mxu1 %v1557_v33 }
  0x43   :  { %395 = vmatprep.subr.bf16.mxu0 %v1297_v0  ;;  %532 = vmatprep.subr.bf16.mxu1 %v1297_v0 }
  0x46   :  { %396 = vmatpush1.bf16.msra.mxu0 %v1429_v17  ;;  %533 = vmatpush1.bf16.msra.mxu1 %v1566_v34 }
  0x47   :  { %409 = vmatprep.subr.bf16.mxu0 %v1297_v0  ;;  %546 = vmatprep.subr.bf16.mxu1 %v1297_v0 }
  0x4a   :  { %410 = vmatpush2.bf16.msra.mxu0 %v1443_v19  ;;  %547 = vmatpush2.bf16.msra.mxu1 %v1575_v35 }
  0x4b   :  { %411 = vmatprep.subr.bf16.mxu0 %v1297_v0  ;;  %548 = vmatprep.subr.bf16.mxu1 %v1297_v0 }
  0x4e   :  { %412 = vmatpush2.bf16.msra.mxu0 %v1457_v21  ;;  %549 = vmatpush2.bf16.msra.mxu1 %v1584_v36 }
  0x4f   :  { %627 = vmatprep.subr.bf16.mxu0 %v1297_v0  ;;  %700 = vmatprep.subr.bf16.mxu1 %v1297_v0 }
  0x51   :  { %414 = vmatmul.mubr.bf16.vlgmr.msra.gmra.mxu0 %v1590_v37  ;;  %551 = vmatmul.mubr.bf16.vlgmr.msra.gmra.mxu1 %v1596_v38 }
  0x52   :  { %628 = vmatpush1.bf16.msra.mxu0 %v1601_v39  ;;  %701 = vmatpush1.bf16.msra.mxu1 %v1601_v39 }
  0x53   :  { %629 = vmatprep.subr.bf16.mxu0 %v1297_v0  ;;  %702 = vmatprep.subr.bf16.mxu1 %v1297_v0 }
  0x54   :  { %1181 = vmatprep.mubr.msk.bf16.mxu0 %vm192_vm0, %v1609_v40  ;;  %1197 = vmatprep.mubr.msk.bf16.mxu1 %vm192_vm0, %v1615_v41 }
  0x56   :  { %630 = vmatpush1.bf16.msra.mxu0 %v1622_v42  ;;  %703 = vmatpush1.bf16.msra.mxu1 %v1622_v42 }
  0x57   :  { %631 = vmatprep.subr.bf16.mxu0 %v1297_v0  ;;  %704 = vmatprep.subr.bf16.mxu1 %v1297_v0 }
  0x59   :  { %422 = vmatmul.mubr.bf16.gmra.mxu0 %v1632_v43  ;;  %559 = vmatmul.mubr.bf16.gmra.mxu1 %v1645_v45 }
  0x5a   :  { %632 = vmatpush1.bf16.msra.mxu0 %v1640_v44  ;;  %705 = vmatpush1.bf16.msra.mxu1 %v1640_v44 }
  0x5b   :  { %633 = vmatprep.subr.bf16.mxu0 %v1297_v0  ;;  %706 = vmatprep.subr.bf16.mxu1 %v1297_v0 }
  0x5c   :  { %1208 = vmatprep.mubr.msk.bf16.mxu0 %vm192_vm0, %v1517_v29  ;;  %1214 = vmatprep.mubr.msk.bf16.mxu1 %vm192_vm0, %v1654_v46 }
  0x5e   :  { %634 = vmatpush1.bf16.msra.mxu0 %v1660_v47  ;;  %707 = vmatpush1.bf16.msra.mxu1 %v1660_v47 }
  0x5f   :  { %635 = vmatprep.subr.bf16.mxu0 %v1297_v0  ;;  %708 = vmatprep.subr.bf16.mxu1 %v1297_v0 }
  0x62   :  { %636 = vmatpush1.bf16.msra.mxu0 %v1674_v48  ;;  %709 = vmatpush1.bf16.msra.mxu1 %v1674_v48 }
  0x63   :  { %637 = vmatprep.subr.bf16.mxu0 %v1297_v0  ;;  %710 = vmatprep.subr.bf16.mxu1 %v1297_v0 }
  0x66   :  { %638 = vmatpush1.bf16.msra.mxu0 %v1683_v49  ;;  %711 = vmatpush1.bf16.msra.mxu1 %v1683_v49 }
  0x67   :  { %639 = vmatprep.subr.bf16.mxu0 %v1297_v0  ;;  %712 = vmatprep.subr.bf16.mxu1 %v1297_v0 }
  0x6a   :  { %640 = vmatpush1.bf16.msra.mxu0 %v1692_v50  ;;  %713 = vmatpush1.bf16.msra.mxu1 %v1692_v50 }
  0x6b   :  { %641 = vmatprep.subr.bf16.mxu0 %v1297_v0  ;;  %714 = vmatprep.subr.bf16.mxu1 %v1297_v0 }
  0x6e   :  { %642 = vmatpush1.bf16.msra.mxu0 %v1701_v51  ;;  %715 = vmatpush1.bf16.msra.mxu1 %v1701_v51 }
  0x6f   :  { %655 = vmatprep.subr.bf16.mxu0 %v1297_v0  ;;  %728 = vmatprep.subr.bf16.mxu1 %v1297_v0 }
  0x72   :  { %656 = vmatpush2.bf16.msra.mxu0 %v1710_v52  ;;  %729 = vmatpush2.bf16.msra.mxu1 %v1710_v52 }
  0x73   :  { %657 = vmatprep.subr.bf16.mxu0 %v1297_v0  ;;  %730 = vmatprep.subr.bf16.mxu1 %v1297_v0 }
  0x76   :  { %658 = vmatpush2.bf16.msra.mxu0 %v1719_v53  ;;  %731 = vmatpush2.bf16.msra.mxu1 %v1719_v53 }
  0x77   :  { %761 = vmatprep.subr.bf16.mxu0 %v1297_v0  ;;  %810 = vmatprep.subr.bf16.mxu1 %v1297_v0 }
  0x79   :  { %660 = vmatmul.mubr.bf16.vlgmr.msra.gmra.mxu0 %v1596_v38  ;;  %733 = vmatmul.mubr.bf16.vlgmr.msra.gmra.mxu1 %v1728_v54 }
  0x7a   :  { %762 = vmatpush1.bf16.msra.mxu0 %v1471_v23  ;;  %811 = vmatpush1.bf16.msra.mxu1 %v1601_v39 }
  0x7b   :  { %763 = vmatprep.subr.bf16.mxu0 %v1297_v0  ;;  %812 = vmatprep.subr.bf16.mxu1 %v1297_v0 }
  0x7c   :  { %1209 = vmatprep.mubr.msk.bf16.mxu0 %vm192_vm0, %v1615_v41  ;;  %1215 = vmatprep.mubr.msk.bf16.mxu1 %vm192_vm0, %v1737_v55 }
  0x7e   :  { %764 = vmatpush1.bf16.msra.mxu0 %v1487_v25  ;;  %813 = vmatpush1.bf16.msra.mxu1 %v1622_v42 }
  0x7f   :  { %765 = vmatprep.subr.bf16.mxu0 %v1297_v0  ;;  %814 = vmatprep.subr.bf16.mxu1 %v1297_v0 }
  0x81   :  { %668 = vmatmul.mubr.bf16.gmra.mxu0 %v1645_v45  ;;  %741 = vmatmul.mubr.bf16.gmra.mxu1 %v1752_v56 }
  0x82   :  { %766 = vmatpush1.bf16.msra.mxu0 %v1505_v27  ;;  %815 = vmatpush1.bf16.msra.mxu1 %v1640_v44 }
  0x83   :  { %767 = vmatprep.subr.bf16.mxu0 %v1297_v0  ;;  %816 = vmatprep.subr.bf16.mxu1 %v1297_v0 }
  0x84   :  { %1216 = vmatprep.mubr.msk.bf16.mxu0 %vm192_vm0, %v1398_v13  ;;  %1218 = vmatprep.mubr.msk.bf16.mxu1 %vm192_vm0, %v1398_v13 }
  0x86   :  { %768 = vmatpush1.bf16.msra.mxu0 %v1526_v30  ;;  %817 = vmatpush1.bf16.msra.mxu1 %v1660_v47 }
  0x87   :  { %769 = vmatprep.subr.bf16.mxu0 %v1297_v0  ;;  %818 = vmatprep.subr.bf16.mxu1 %v1297_v0 }
  0x8a   :  { %770 = vmatpush1.bf16.msra.mxu0 %v1539_v31  ;;  %819 = vmatpush1.bf16.msra.mxu1 %v1674_v48 }
  0x8b   :  { %771 = vmatprep.subr.bf16.mxu0 %v1297_v0  ;;  %820 = vmatprep.subr.bf16.mxu1 %v1297_v0 }
  0x8e   :  { %772 = vmatpush1.bf16.msra.mxu0 %v1548_v32  ;;  %821 = vmatpush1.bf16.msra.mxu1 %v1683_v49 }
  0x8f   :  { %773 = vmatprep.subr.bf16.mxu0 %v1297_v0  ;;  %822 = vmatprep.subr.bf16.mxu1 %v1297_v0 }
  0x92   :  { %774 = vmatpush1.bf16.msra.mxu0 %v1557_v33  ;;  %823 = vmatpush1.bf16.msra.mxu1 %v1692_v50 }
  0x93   :  { %775 = vmatprep.subr.bf16.mxu0 %v1297_v0  ;;  %824 = vmatprep.subr.bf16.mxu1 %v1297_v0 }
  0x96   :  { %776 = vmatpush1.bf16.msra.mxu0 %v1566_v34  ;;  %825 = vmatpush1.bf16.msra.mxu1 %v1701_v51 }
  0x97   :  { %789 = vmatprep.subr.bf16.mxu0 %v1297_v0  ;;  %838 = vmatprep.subr.bf16.mxu1 %v1297_v0 }
  0x9a   :  { %790 = vmatpush2.bf16.msra.mxu0 %v1575_v35  ;;  %839 = vmatpush2.bf16.msra.mxu1 %v1710_v52 }
  0x9b   :  { %791 = vmatprep.subr.bf16.mxu0 %v1297_v0  ;;  %840 = vmatprep.subr.bf16.mxu1 %v1297_v0 }
  0x9e   :  { %792 = vmatpush2.bf16.msra.mxu0 %v1584_v36  ;;  %841 = vmatpush2.bf16.msra.mxu1 %v1719_v53 }
  0x9f   :  { %859 = vmatprep.subr.bf16.mxu0 %v1297_v0  ;;  %912 = vmatprep.subr.bf16.mxu1 %v1297_v0 }
  0xa1   :  { %794 = vmatmul.mubr.bf16.vlgmr.msra.gmra.mxu0 %v1463_v22  ;;  %843 = vmatmul.mubr.bf16.vlgmr.msra.gmra.mxu1 %v1463_v22 }
  0xa2   :  { %860 = vmatpush1.bf16.msra.mxu0 %v1601_v39  ;;  %913 = vmatpush1.bf16.msra.mxu1 %v1318_v1 }
  0xa3   :  { %861 = vmatprep.subr.bf16.mxu0 %v1297_v0  ;;  %914 = vmatprep.subr.bf16.mxu1 %v1297_v0 }
  0xa4   :  { %1217 = vmatprep.mubr.msk.bf16.mxu0 %vm192_vm0, %v1477_v24  ;;  %1219 = vmatprep.mubr.msk.bf16.mxu1 %vm192_vm0, %v1477_v24 }
  0xa6   :  { %862 = vmatpush1.bf16.msra.mxu0 %v1622_v42  ;;  %915 = vmatpush1.bf16.msra.mxu1 %v1329_v3 }
  0xa7   :  { %863 = vmatprep.subr.bf16.mxu0 %v1297_v0  ;;  %916 = vmatprep.subr.bf16.mxu1 %v1297_v0 }
  0xa9   :  { %802 = vmatmul.mubr.bf16.gmra.mxu0 %v1495_v26  ;;  %851 = vmatmul.mubr.bf16.gmra.mxu1 %v1495_v26 }
  0xaa   :  { %864 = vmatpush1.bf16.msra.mxu0 %v1640_v44  ;;  %917 = vmatpush1.bf16.msra.mxu1 %v1343_v5 }
  0xab   :  { %865 = vmatprep.subr.bf16.mxu0 %v1297_v0  ;;  %918 = vmatprep.subr.bf16.mxu1 %v1297_v0 }
  0xac   :  { %1220 = vmatprep.mubr.msk.bf16.mxu0 %vm192_vm0, %v1511_v28  ;;  %1222 = vmatprep.mubr.msk.bf16.mxu1 %vm192_vm0, %v1517_v29 }
  0xae   :  { %866 = vmatpush1.bf16.msra.mxu0 %v1660_v47  ;;  %919 = vmatpush1.bf16.msra.mxu1 %v1357_v7 }
  0xaf   :  { %867 = vmatprep.subr.bf16.mxu0 %v1297_v0  ;;  %920 = vmatprep.subr.bf16.mxu1 %v1297_v0 }
  0xb2   :  { %868 = vmatpush1.bf16.msra.mxu0 %v1674_v48  ;;  %921 = vmatpush1.bf16.msra.mxu1 %v1371_v9 }
  0xb3   :  { %869 = vmatprep.subr.bf16.mxu0 %v1297_v0  ;;  %922 = vmatprep.subr.bf16.mxu1 %v1297_v0 }
  0xb6   :  { %870 = vmatpush1.bf16.msra.mxu0 %v1683_v49  ;;  %923 = vmatpush1.bf16.msra.mxu1 %v1385_v11 }
  0xb7   :  { %871 = vmatprep.subr.bf16.mxu0 %v1297_v0  ;;  %924 = vmatprep.subr.bf16.mxu1 %v1297_v0 }
  0xba   :  { %872 = vmatpush1.bf16.msra.mxu0 %v1692_v50  ;;  %925 = vmatpush1.bf16.msra.mxu1 %v1404_v14 }
  0xbb   :  { %873 = vmatprep.subr.bf16.mxu0 %v1297_v0  ;;  %926 = vmatprep.subr.bf16.mxu1 %v1297_v0 }
  0xbe   :  { %874 = vmatpush1.bf16.msra.mxu0 %v1701_v51  ;;  %927 = vmatpush1.bf16.msra.mxu1 %v1422_v16 }
  0xbf   :  { %887 = vmatprep.subr.bf16.mxu0 %v1297_v0  ;;  %940 = vmatprep.subr.bf16.mxu1 %v1297_v0 }
  0xc2   :  { %888 = vmatpush2.bf16.msra.mxu0 %v1710_v52  ;;  %941 = vmatpush2.bf16.msra.mxu1 %v1436_v18 }
  0xc3   :  { %889 = vmatprep.subr.bf16.mxu0 %v1297_v0  ;;  %942 = vmatprep.subr.bf16.mxu1 %v1297_v0 }
  0xc6   :  { %890 = vmatpush2.bf16.msra.mxu0 %v1719_v53  ;;  %943 = vmatpush2.bf16.msra.mxu1 %v1450_v20 }
  0xc7   :  { %961 = vmatprep.subr.bf16.mxu0 %v1297_v0  ;;  %1010 = vmatprep.subr.bf16.mxu1 %v1297_v0 }
  0xc9   :  { %892 = vmatmul.mubr.bf16.vlgmr.msra.gmra.mxu0 %v1590_v37  ;;  %945 = vmatmul.mubr.bf16.vlgmr.msra.gmra.mxu1 %v1596_v38 }
  0xca   :  { %962 = vmatpush1.bf16.msra.mxu0 %v1323_v2  ;;  %1011 = vmatpush1.bf16.msra.mxu1 %v1323_v2 }
  0xcb   :  { %963 = vmatprep.subr.bf16.mxu0 %v1297_v0  ;;  %1012 = vmatprep.subr.bf16.mxu1 %v1297_v0 }
  0xcc   :  { %1221 = vmatprep.mubr.msk.bf16.mxu0 %vm192_vm0, %v1609_v40  ;;  %1223 = vmatprep.mubr.msk.bf16.mxu1 %vm192_vm0, %v1615_v41 }
  0xce   :  { %964 = vmatpush1.bf16.msra.mxu0 %v1336_v4  ;;  %1013 = vmatpush1.bf16.msra.mxu1 %v1336_v4 }
  0xcf   :  { %965 = vmatprep.subr.bf16.mxu0 %v1297_v0  ;;  %1014 = vmatprep.subr.bf16.mxu1 %v1297_v0 }
  0xd1   :  { %900 = vmatmul.mubr.bf16.gmra.mxu0 %v1632_v43  ;;  %953 = vmatmul.mubr.bf16.gmra.mxu1 %v1645_v45 }
  0xd2   :  { %966 = vmatpush1.bf16.msra.mxu0 %v1350_v6  ;;  %1015 = vmatpush1.bf16.msra.mxu1 %v1350_v6 }
  0xd3   :  { %967 = vmatprep.subr.bf16.mxu0 %v1297_v0  ;;  %1016 = vmatprep.subr.bf16.mxu1 %v1297_v0 }
  0xd4   :  { %1224 = vmatprep.mubr.msk.bf16.mxu0 %vm192_vm0, %v1517_v29  ;;  %1226 = vmatprep.mubr.msk.bf16.mxu1 %vm192_vm0, %v1654_v46 }
  0xd6   :  { %968 = vmatpush1.bf16.msra.mxu0 %v1364_v8  ;;  %1017 = vmatpush1.bf16.msra.mxu1 %v1364_v8 }
  0xd7   :  { %969 = vmatprep.subr.bf16.mxu0 %v1297_v0  ;;  %1018 = vmatprep.subr.bf16.mxu1 %v1297_v0 }
  0xda   :  { %970 = vmatpush1.bf16.msra.mxu0 %v1378_v10  ;;  %1019 = vmatpush1.bf16.msra.mxu1 %v1378_v10 }
  0xdb   :  { %971 = vmatprep.subr.bf16.mxu0 %v1297_v0  ;;  %1020 = vmatprep.subr.bf16.mxu1 %v1297_v0 }
  0xde   :  { %972 = vmatpush1.bf16.msra.mxu0 %v1392_v12  ;;  %1021 = vmatpush1.bf16.msra.mxu1 %v1392_v12 }
  0xdf   :  { %973 = vmatprep.subr.bf16.mxu0 %v1297_v0  ;;  %1022 = vmatprep.subr.bf16.mxu1 %v1297_v0 }
  0xe2   :  { %974 = vmatpush1.bf16.msra.mxu0 %v1413_v15  ;;  %1023 = vmatpush1.bf16.msra.mxu1 %v1413_v15 }
  0xe3   :  { %975 = vmatprep.subr.bf16.mxu0 %v1297_v0  ;;  %1024 = vmatprep.subr.bf16.mxu1 %v1297_v0 }
  0xe6   :  { %976 = vmatpush1.bf16.msra.mxu0 %v1429_v17  ;;  %1025 = vmatpush1.bf16.msra.mxu1 %v1429_v17 }
  0xe7   :  { %989 = vmatprep.subr.bf16.mxu0 %v1297_v0  ;;  %1038 = vmatprep.subr.bf16.mxu1 %v1297_v0 }
  0xe9   :  { %v233_v57 = vpop.f32.mrf.mxu0  ;;  %v342_v58 = vpop.f32.mrf.mxu1 }
  0xea   :  { %990 = vmatpush2.bf16.msra.mxu0 %v1443_v19  ;;  %v343_v59 = vadd.f32 %v342_v58, %v233_v57  ;;  %1039 = vmatpush2.bf16.msra.mxu1 %v1443_v19 }
  0xeb   :  { %v235_v60 = vpop.f32.mrf.mxu0  ;;  %991 = vmatprep.subr.bf16.mxu0 %v1297_v0  ;;  %v344_v61 = vpop.f32.mrf.mxu1  ;;  %1040 = vmatprep.subr.bf16.mxu1 %v1297_v0 }
  0xed   :  { %v236_v62 = vpop.f32.mrf.mxu0  ;;  %v345_v63 = vpop.f32.mrf.mxu1 }
  0xee   :  { %992 = vmatpush2.bf16.msra.mxu0 %v1457_v21  ;;  %v346_v1 = vadd.f32 %v345_v63, %v236_v62  ;;  %1041 = vmatpush2.bf16.msra.mxu1 %v1457_v21 }
  0xef   :  { %v238_v2 = vpop.f32.mrf.mxu0  ;;  %v347_v3 = vpop.f32.mrf.mxu1 }
  0xf1   :  { %994 = vmatmul.mubr.bf16.vlgmr.msra.gmra.mxu0 %v1596_v38  ;;  %v241_v4 = vpop.f32.mrf.mxu0  ;;  %1043 = vmatmul.mubr.bf16.vlgmr.msra.gmra.mxu1 %v1728_v54  ;;  %v350_v5 = vpop.f32.mrf.mxu1 }
  0xf2   :  { %1225 = vmatprep.mubr.msk.bf16.mxu0 %vm192_vm0, %v1615_v41  ;;  %1227 = vmatprep.mubr.msk.bf16.mxu1 %vm192_vm0, %v1737_v55  ;;  %v351_v6 = vadd.f32 %v350_v5, %v241_v4 }
  0xf3   :  { %v243_v0 = vpop.f32.mrf.mxu0  ;;  %v352_v7 = vpop.f32.mrf.mxu1 }
  0xf5   :  { %v244_v8 = vpop.f32.mrf.mxu0  ;;  %v353_v9 = vpop.f32.mrf.mxu1 }
  0xf6   :  { %v354_v11 = vadd.f32 %v353_v9, %v244_v8 }
  0xf7   :  { %v246_v10 = vpop.f32.mrf.mxu0  ;;  %v355_v12 = vpop.f32.mrf.mxu1 }
  0xf9   :  { %1002 = vmatmul.mubr.bf16.gmra.mxu0 %v1645_v45  ;;  %1051 = vmatmul.mubr.bf16.gmra.mxu1 %v1752_v56 }
 0x111   :  { %v415_v13 = vpop.f32.mrf.mxu0  ;;  %v552_v14 = vpop.f32.mrf.mxu1 }
 0x112   :  { %v430_v33 = vadd.f32 %v415_v13, %v343_v59 }
 0x113   :  { %v417_v15 = vpop.f32.mrf.mxu0  ;;  %v554_v16 = vpop.f32.mrf.mxu1 }
 0x115   :  { %v418_v17 = vpop.f32.mrf.mxu0  ;;  %v555_v18 = vpop.f32.mrf.mxu1 }
 0x116   :  { %v431_v41 = vadd.f32 %v418_v17, %v346_v1 }
 0x117   :  { %v420_v19 = vpop.f32.mrf.mxu0  ;;  %v557_v20 = vpop.f32.mrf.mxu1 }
 0x119   :  { %v423_v21 = vpop.f32.mrf.mxu0  ;;  %v560_v22 = vpop.f32.mrf.mxu1 }
 0x11a   :  { %v432_v49 = vadd.f32 %v423_v21, %v351_v6 }
 0x11b   :  { %v425_v23 = vpop.f32.mrf.mxu0  ;;  %v562_v24 = vpop.f32.mrf.mxu1 }
 0x11d   :  { %v426_v25 = vpop.f32.mrf.mxu0  ;;  %v563_v26 = vpop.f32.mrf.mxu1 }
 0x11e   :  { %v433_v57 = vadd.f32 %v426_v25, %v354_v11 }
 0x11f   :  { %v428_v27 = vpop.f32.mrf.mxu0  ;;  %v565_v28 = vpop.f32.mrf.mxu1 }
 0x139   :  { %v661_v29 = vpop.f32.mrf.mxu0  ;;  %v734_v31 = vpop.f32.mrf.mxu1 }
 0x13a   :  { %v662_v30 = vadd.f32 %v661_v29, %v552_v14 }
 0x13b   :  { %v663_v32 = vpop.f32.mrf.mxu0  ;;  %v736_v35 = vpop.f32.mrf.mxu1 }
 0x13c   :  { %v749_v34 = vadd.f32 %v734_v31, %v662_v30 }
 0x13d   :  { %v664_v36 = vpop.f32.mrf.mxu0  ;;  %v737_v39 = vpop.f32.mrf.mxu1 }
 0x13e   :  { %v753_v37 = vsub.f32 %v430_v33, %v749_v34  ;;  %v665_v38 = vadd.f32 %v664_v36, %v555_v18 }
 0x13f   :  { %v666_v40 = vpop.f32.mrf.mxu0  ;;  %v739_v43 = vpop.f32.mrf.mxu1 }
 0x140   :  { %757 = vst [vmem:[%s1931_s2] sm:$0xff] %v753_v37  ;;  %v750_v42 = vadd.f32 %v737_v39, %v665_v38 }
 0x141   :  { %v669_v44 = vpop.f32.mrf.mxu0  ;;  %v742_v47 = vpop.f32.mrf.mxu1 }
 0x142   :  { %v754_v45 = vsub.f32 %v431_v41, %v750_v42  ;;  %v670_v46 = vadd.f32 %v669_v44, %v560_v22 }
 0x143   :  { %v671_v48 = vpop.f32.mrf.mxu0  ;;  %v744_v51 = vpop.f32.mrf.mxu1 }
 0x144   :  { %758 = vst [vmem:[%s1931_s2 + $0x8] sm:$0xff] %v754_v45  ;;  %v751_v50 = vadd.f32 %v742_v47, %v670_v46 }
 0x145   :  { %v672_v52 = vpop.f32.mrf.mxu0  ;;  %v745_v55 = vpop.f32.mrf.mxu1 }
 0x146   :  { %v755_v53 = vsub.f32 %v432_v49, %v751_v50  ;;  %v673_v54 = vadd.f32 %v672_v52, %v563_v26 }
 0x147   :  { %v674_v56 = vpop.f32.mrf.mxu0  ;;  %v747_v59 = vpop.f32.mrf.mxu1 }
 0x148   :  { %759 = vst [vmem:[%s1931_s2 + $0x10] sm:$0xff] %v755_v53  ;;  %v752_v58 = vadd.f32 %v745_v55, %v673_v54 }
 0x14a   :  { %v756_v60 = vsub.f32 %v433_v57, %v752_v58 }
 0x14c   :  { %760 = vst [vmem:[%s1931_s2 + $0x18] sm:$0xff] %v756_v60 }
 0x161   :  { %v795_v61 = vpop.f32.mrf.mxu0  ;;  %v844_v62 = vpop.f32.mrf.mxu1 }
 0x162   :  { %v845_v63 = vadd.f32 %v844_v62, %v795_v61 }
 0x163   :  { %v797_v1 = vpop.f32.mrf.mxu0  ;;  %v846_v2 = vpop.f32.mrf.mxu1 }
 0x165   :  { %v798_v3 = vpop.f32.mrf.mxu0  ;;  %v847_v4 = vpop.f32.mrf.mxu1 }
 0x166   :  { %v848_v5 = vadd.f32 %v847_v4, %v798_v3 }
 0x167   :  { %v800_v0 = vpop.f32.mrf.mxu0  ;;  %v849_v6 = vpop.f32.mrf.mxu1 }
 0x169   :  { %v803_v7 = vpop.f32.mrf.mxu0  ;;  %v852_v8 = vpop.f32.mrf.mxu1 }
 0x16a   :  { %v853_v10 = vadd.f32 %v852_v8, %v803_v7 }
 0x16b   :  { %v805_v9 = vpop.f32.mrf.mxu0  ;;  %v854_v11 = vpop.f32.mrf.mxu1 }
 0x16d   :  { %v806_v12 = vpop.f32.mrf.mxu0  ;;  %v855_v13 = vpop.f32.mrf.mxu1 }
 0x16e   :  { %v856_v15 = vadd.f32 %v855_v13, %v806_v12 }
 0x16f   :  { %v808_v14 = vpop.f32.mrf.mxu0  ;;  %v857_v16 = vpop.f32.mrf.mxu1 }
 0x189   :  { %v893_v17 = vpop.f32.mrf.mxu0  ;;  %v946_v18 = vpop.f32.mrf.mxu1 }
 0x18a   :  { %v908_v37 = vadd.f32 %v893_v17, %v845_v63 }
 0x18b   :  { %v895_v19 = vpop.f32.mrf.mxu0  ;;  %v948_v20 = vpop.f32.mrf.mxu1 }
 0x18d   :  { %v896_v21 = vpop.f32.mrf.mxu0  ;;  %v949_v22 = vpop.f32.mrf.mxu1 }
 0x18e   :  { %v909_v45 = vadd.f32 %v896_v21, %v848_v5 }
 0x18f   :  { %v898_v23 = vpop.f32.mrf.mxu0  ;;  %v951_v24 = vpop.f32.mrf.mxu1 }
 0x191   :  { %v901_v25 = vpop.f32.mrf.mxu0  ;;  %v954_v26 = vpop.f32.mrf.mxu1 }
 0x192   :  { %v910_v53 = vadd.f32 %v901_v25, %v853_v10 }
 0x193   :  { %v903_v27 = vpop.f32.mrf.mxu0  ;;  %v956_v28 = vpop.f32.mrf.mxu1 }
 0x195   :  { %v904_v29 = vpop.f32.mrf.mxu0  ;;  %v957_v30 = vpop.f32.mrf.mxu1 }
 0x196   :  { %v911_v61 = vadd.f32 %v904_v29, %v856_v15 }
 0x197   :  { %v906_v31 = vpop.f32.mrf.mxu0  ;;  %v959_v32 = vpop.f32.mrf.mxu1 }
 0x1b1   :  { %v995_v33 = vpop.f32.mrf.mxu0  ;;  %v1044_v35 = vpop.f32.mrf.mxu1 }
 0x1b2   :  { %v996_v34 = vadd.f32 %v995_v33, %v946_v18 }
 0x1b3   :  { %v997_v36 = vpop.f32.mrf.mxu0  ;;  %v1046_v39 = vpop.f32.mrf.mxu1 }
 0x1b4   :  { %v1059_v38 = vadd.f32 %v1044_v35, %v996_v34 }
 0x1b5   :  { %v998_v40 = vpop.f32.mrf.mxu0  ;;  %v1047_v43 = vpop.f32.mrf.mxu1 }
 0x1b6   :  { %v1063_v41 = vadd.f32 %v1059_v38, %v908_v37  ;;  %v999_v42 = vadd.f32 %v998_v40, %v949_v22 }
 0x1b7   :  { %v1000_v44 = vpop.f32.mrf.mxu0  ;;  %v1049_v47 = vpop.f32.mrf.mxu1 }
 0x1b8   :  { %1228 = vst [vmem:[%s1931_s2 + $0x20] sm:$0xff] %v1063_v41  ;;  %v1060_v46 = vadd.f32 %v1047_v43, %v999_v42 }
 0x1b9   :  { %v1003_v48 = vpop.f32.mrf.mxu0  ;;  %v1052_v51 = vpop.f32.mrf.mxu1 }
 0x1ba   :  { %v1064_v49 = vadd.f32 %v1060_v46, %v909_v45  ;;  %v1004_v50 = vadd.f32 %v1003_v48, %v954_v26 }
 0x1bb   :  { %v1005_v52 = vpop.f32.mrf.mxu0  ;;  %v1054_v55 = vpop.f32.mrf.mxu1 }
 0x1bc   :  { %1229 = vst [vmem:[%s1931_s2 + $0x28] sm:$0xff] %v1064_v49  ;;  %v1061_v54 = vadd.f32 %v1052_v51, %v1004_v50 }
 0x1bd   :  { %v1006_v56 = vpop.f32.mrf.mxu0  ;;  %v1055_v59 = vpop.f32.mrf.mxu1 }
 0x1be   :  { %v1065_v57 = vadd.f32 %v1061_v54, %v910_v53  ;;  %v1007_v58 = vadd.f32 %v1006_v56, %v957_v30 }
 0x1bf   :  { %v1008_v60 = vpop.f32.mrf.mxu0  ;;  %v1057_v63 = vpop.f32.mrf.mxu1 }
 0x1c0   :  { %1230 = vst [vmem:[%s1931_s2 + $0x30] sm:$0xff] %v1065_v57  ;;  %v1062_v62 = vadd.f32 %v1055_v59, %v1007_v58 }
 0x1c2   :  { %v1066_v1 = vadd.f32 %v1062_v62, %v911_v61 }
 0x1c4   :  { %1231 = vst [vmem:[%s1931_s2 + $0x38] sm:$0xff] %v1066_v1 }

</bundles_post_ra>
